<compile_context>
chip_gen: v7x
topology: tpu7x:2x2x1
jax: 0.10.0
libtpu: 0.0.40
codegen_flags: <defaults>
</compile_context>

<pallas_src>
import functools

import jax
import jax.numpy as jnp
from jax.experimental import pallas as pl
from jax.experimental.pallas import tpu as pltpu


def _round_up(x, m):
    return (x + m - 1) // m * m


def _activation(x, name):
    # Matches ValueNetwork._get_activation: unknown names fall back to Tanh.
    if name == "relu":
        return jnp.maximum(x, 0.0)
    if name == "leaky_relu":
        return jnp.where(x >= 0.0, x, 0.01 * x)
    return jnp.tanh(x)


def _value_mlp_kernel(x_ref, w1_ref, b1_ref, w2_ref, b2_ref, w3_ref, b3_ref,
                      o_ref, *, activation):
    # In-kernel bf16 cast of the x tile (VPU op, hidden under the input DMA).
    x = x_ref[...].astype(jnp.bfloat16)

    # Layer 1: bf16 MXU matmul, f32 accumulate, bias add in f32.
    z1 = jnp.dot(x, w1_ref[...], preferred_element_type=jnp.float32) + b1_ref[...]
    # Activation in bf16: feeds the bf16 layer-2 matmul anyway, and bf16 EUP is
    # ~2x f32 throughput on v6e/v7x (neutral on v5e).
    h1 = _activation(z1.astype(jnp.bfloat16), activation)

    # Layer 2: bf16 MXU matmul, f32 accumulate; activation stays f32 (feeds the
    # f32 output head).
    z2 = jnp.dot(h1, w2_ref[...], preferred_element_type=jnp.float32) + b2_ref[...]
    h2 = _activation(z2, activation)

    # Output head Linear(H2, 1): degenerate N=1 matmul done as a VPU multiply
    # + row reduce (idle VPU/XLU slots, no 1-lane MXU pass).  Result is stored
    # lane-dense as a (1, 1, tile) row; the wrapper restores the (B, 1) shape.
    out = jnp.sum(h2 * w3_ref[...], axis=-1)                     # (tile,)
    o_ref[...] = (out[None, None, :] + b3_ref[...]).astype(o_ref.dtype)


def prepare_value_network_params(params):
    """Hoisted per-call weight prep: bf16 MXU weights, f32 biases, w3 as a row.

    Call once (outside the serving loop) and reuse the result for every forward.
    """
    w1, b1 = params["w1"], params["b1"]
    w2, b2 = params["w2"], params["b2"]
    w3, b3 = params["w3"], params["b3"]
    h2 = w2.shape[1]
    return {
        "w1": w1.astype(jnp.bfloat16),
        "b1": b1.reshape(1, -1).astype(jnp.float32),
        "w2": w2.astype(jnp.bfloat16),
        "b2": b2.reshape(1, -1).astype(jnp.float32),
        "w3_row": w3.reshape(1, h2).astype(jnp.float32),
        "b3": b3.reshape(1, 1).astype(jnp.float32),
    }


def value_network_forward(state, prepared, *, batch_tile=1024,
                          num_tensorcores=1, activation="tanh"):
    """ValueNetwork forward via one fused Pallas kernel.

    state:    [B, state_dim] float32
    prepared: output of prepare_value_network_params(params)
    num_tensorcores: set 2 on v7x so the batch grid keeps >=2 steps and the
                     "parallel" axis shards across both TensorCores.
    returns:  [B, 1] float32
    """
    w1, b1 = prepared["w1"], prepared["b1"]
    w2, b2 = prepared["w2"], prepared["b2"]
    w3_row, b3 = prepared["w3_row"], prepared["b3"]

    B, D = state.shape
    H1 = w1.shape[1]
    H2 = w2.shape[1]

    # --- batch tile selection ------------------------------------------------
    # 8-aligned (sublane) tiles.  Default 1024 rows per step so MXU/EUP work per
    # step dwarfs the ~0.35us fixed step overhead; small batches collapse to a
    # single padded block.  On v7x, cap the tile so there are >= num_tensorcores
    # grid steps to shard across both TCs.
    tile = min(_round_up(batch_tile, 8), _round_up(B, 8))
    if num_tensorcores > 1:
        tile = min(tile, _round_up(pl.cdiv(_round_up(B, 8), num_tensorcores), 8))
    tile = max(8, tile)
    padded_b = _round_up(B, tile)
    n_steps = padded_b // tile
    if padded_b != B:
        state = jnp.pad(state, ((0, padded_b - B), (0, 0)))  # tail rows sliced off below

    # Working-set estimate: double-buffered f32 x tile + resident weights/biases
    # + double-buffered output row.  Only raise the scoped-VMEM limit if the
    # smallest default (16 MiB on v5e) would be tight; cap at v7x's 64 MiB.
    est = (2 * tile * D * 4
           + D * H1 * 2 + H1 * 4
           + H1 * H2 * 2 + H2 * 4
           + H2 * 4 + 4
           + 2 * tile * 4)
    vmem_limit = min(64 << 20, 2 * est) if 2 * est > (16 << 20) else None

    # Grid-invariant operands (weights/biases): constant index maps keep them
    # resident in VMEM across all batch tiles.
    full = lambda shape: pl.BlockSpec(shape, lambda i: (0, 0))

    out = pl.pallas_call(
        functools.partial(_value_mlp_kernel, activation=activation),
        out_shape=jax.ShapeDtypeStruct((n_steps, 1, tile), jnp.float32),
        grid_spec=pl.GridSpec(
            grid=(n_steps,),
            in_specs=[
                pl.BlockSpec((tile, D), lambda i: (i, 0)),  # x tile (f32, cast in-kernel)
                full((D, H1)),   # w1 (bf16), resident
                full((1, H1)),   # b1 (f32)
                full((H1, H2)),  # w2 (bf16), resident
                full((1, H2)),   # b2 (f32)
                full((1, H2)),   # w3 row (f32)
                full((1, 1)),    # b3 (f32)
            ],
            # Lane-dense output: one (1, 1, tile) row per grid step.
            out_specs=pl.BlockSpec((1, 1, tile), lambda i: (i, 0, 0)),
        ),
        compiler_params=pltpu.CompilerParams(
            dimension_semantics=("parallel",),
            vmem_limit_bytes=vmem_limit),
    )(state, w1, b1, w2, b2, w3_row, b3)

    # (n_steps, 1, tile) -> (padded_b, 1); drop padded tail rows.
    return out.reshape(padded_b, 1)[:B]


def xavier_uniform(key, fan_in, fan_out, dtype=jnp.float32):
    """torch.nn.init.xavier_uniform_ equivalent: U(-a, a), a = sqrt(6/(fi+fo))."""
    limit = jnp.sqrt(6.0 / (fan_in + fan_out))
    return jax.random.uniform(key, (fan_in, fan_out), dtype=dtype,
                              minval=-limit, maxval=limit)


def init_value_network_params(key, state_dim, hidden_dims):
    """Parameter init matching ValueNetwork._init_weights (weights [in, out])."""
    dims = [state_dim] + list(hidden_dims) + [1]
    params = {}
    keys = jax.random.split(key, len(dims) - 1)
    for li, (fi, fo) in enumerate(zip(dims[:-1], dims[1:]), start=1):
        params[f"w{li}"] = xavier_uniform(keys[li - 1], fi, fo)
        params[f"b{li}"] = jnp.zeros((1, fo), jnp.float32)
    return params


if __name__ == "__main__":
    # Small shapes consistent with the module's forward: [batch, state_dim].
    state_dim = 16
    hidden_dims = [64, 64]   # small stand-in for the default [256, 256]

    key = jax.random.PRNGKey(0)
    k_params, k_state1, k_state2 = jax.random.split(key, 3)

    params = init_value_network_params(k_params, state_dim, hidden_dims)
    prepared = prepare_value_network_params(params)   # hoisted weight prep (once)

    def ref_fn(x):
        h = jnp.tanh(x @ params["w1"] + params["b1"])
        h = jnp.tanh(h @ params["w2"] + params["b2"])
        return h @ params["w3"] + params["b3"]

    # 1) Small ragged batch (not a multiple of 8) -> one padded block.
    state = jax.random.normal(k_state1, (20, state_dim), dtype=jnp.float32)
    value = jax.block_until_ready(value_network_forward(state, prepared))
    assert value.shape == (20, 1)
    assert jnp.allclose(value, ref_fn(state), atol=5e-2, rtol=5e-2)

    # 2) v7x-style 2-TC split: >=2 grid steps even for a small batch.
    value_2tc = jax.block_until_ready(
        value_network_forward(state, prepared, num_tensorcores=2))
    assert value_2tc.shape == (20, 1)
    assert jnp.allclose(value_2tc, ref_fn(state), atol=5e-2, rtol=5e-2)

    # 3) Larger ragged batch with an explicit smaller tile -> multi-step grid
    #    with a zero-padded tail tile and lane-dense per-step output rows.
    state_big = jax.random.normal(k_state2, (300, state_dim), dtype=jnp.float32)
    value_big = jax.block_until_ready(
        value_network_forward(state_big, prepared, batch_tile=128))
    assert value_big.shape == (300, 1)
    assert jnp.allclose(value_big, ref_fn(state_big), atol=5e-2, rtol=5e-2)

    print("KERNEL_OK")
</pallas_src>

<mosaic_0001>
module attributes {stable_mosaic.version = 11 : i64} {
  func.func @_value_mlp_kernel(%arg0: i32, %arg1: memref<24x16xf32, #tpu.memory_space<vmem>>, %arg2: memref<16x64xbf16, #tpu.memory_space<vmem>>, %arg3: memref<1x64xf32, #tpu.memory_space<vmem>>, %arg4: memref<64x64xbf16, #tpu.memory_space<vmem>>, %arg5: memref<1x64xf32, #tpu.memory_space<vmem>>, %arg6: memref<1x64xf32, #tpu.memory_space<vmem>>, %arg7: memref<1x1xf32, #tpu.memory_space<vmem>>, %arg8: memref<1x1x24xf32, #tpu.memory_space<vmem>>) attributes {dimension_semantics = [#tpu.dimension_semantics<parallel>], iteration_bounds = array<i64: 1>, scalar_prefetch = 0 : i64, scratch_operands = 0 : i64, tpu.core_type = #tpu.core_type<tc>, window_params = [{transform_indices = @transform_0, window_bounds = array<i64: 24, 16>}, {pipeline_mode = #tpu.pipeline_mode<synchronous>, transform_indices = @transform_1, window_bounds = array<i64: 16, 64>}, {pipeline_mode = #tpu.pipeline_mode<synchronous>, transform_indices = @transform_2, window_bounds = array<i64: 1, 64>}, {pipeline_mode = #tpu.pipeline_mode<synchronous>, transform_indices = @transform_3, window_bounds = array<i64: 64, 64>}, {pipeline_mode = #tpu.pipeline_mode<synchronous>, transform_indices = @transform_4, window_bounds = array<i64: 1, 64>}, {pipeline_mode = #tpu.pipeline_mode<synchronous>, transform_indices = @transform_5, window_bounds = array<i64: 1, 64>}, {pipeline_mode = #tpu.pipeline_mode<synchronous>, transform_indices = @transform_6, window_bounds = array<i64: 1, 1>}, {transform_indices = @transform_7, window_bounds = array<i64: 1, 1, 24>}]} {
    %c0 = arith.constant 0 : index
    %c0_0 = arith.constant 0 : index
    %0 = vector.load %arg1[%c0, %c0_0] : memref<24x16xf32, #tpu.memory_space<vmem>>, vector<24x16xf32>
    %1 = arith.truncf %0 : vector<24x16xf32> to vector<24x16xbf16>
    %c0_1 = arith.constant 0 : index
    %c0_2 = arith.constant 0 : index
    %2 = vector.load %arg2[%c0_1, %c0_2] : memref<16x64xbf16, #tpu.memory_space<vmem>>, vector<16x64xbf16>
    %cst = arith.constant dense<0.000000e+00> : vector<24x64xf32>
    %3 = tpu.matmul %1, %2, %cst {dimension_numbers = #tpu.dot_dimension_numbers<[1], [0], [0], [1], [0, 0, 1, 1], [], []>} : vector<24x16xbf16>, vector<16x64xbf16>, vector<24x64xf32> -> vector<24x64xf32>
    %c0_3 = arith.constant 0 : index
    %c0_4 = arith.constant 0 : index
    %4 = vector.load %arg3[%c0_3, %c0_4] : memref<1x64xf32, #tpu.memory_space<vmem>>, vector<1x64xf32>
    %5 = vector.broadcast %4 : vector<1x64xf32> to vector<24x64xf32>
    %6 = arith.addf %3, %5 : vector<24x64xf32>
    %7 = arith.truncf %6 : vector<24x64xf32> to vector<24x64xbf16>
    %8 = math.tanh %7 : vector<24x64xbf16>
    %c0_5 = arith.constant 0 : index
    %c0_6 = arith.constant 0 : index
    %9 = vector.load %arg4[%c0_5, %c0_6] : memref<64x64xbf16, #tpu.memory_space<vmem>>, vector<64x64xbf16>
    %cst_7 = arith.constant dense<0.000000e+00> : vector<24x64xf32>
    %10 = tpu.matmul %8, %9, %cst_7 {dimension_numbers = #tpu.dot_dimension_numbers<[1], [0], [0], [1], [0, 0, 1, 1], [], []>} : vector<24x64xbf16>, vector<64x64xbf16>, vector<24x64xf32> -> vector<24x64xf32>
    %c0_8 = arith.constant 0 : index
    %c0_9 = arith.constant 0 : index
    %11 = vector.load %arg5[%c0_8, %c0_9] : memref<1x64xf32, #tpu.memory_space<vmem>>, vector<1x64xf32>
    %12 = vector.broadcast %11 : vector<1x64xf32> to vector<24x64xf32>
    %13 = arith.addf %10, %12 : vector<24x64xf32>
    %14 = math.tanh %13 : vector<24x64xf32>
    %c0_10 = arith.constant 0 : index
    %c0_11 = arith.constant 0 : index
    %15 = vector.load %arg6[%c0_10, %c0_11] : memref<1x64xf32, #tpu.memory_space<vmem>>, vector<1x64xf32>
    %16 = vector.broadcast %15 : vector<1x64xf32> to vector<24x64xf32>
    %17 = arith.mulf %14, %16 : vector<24x64xf32>
    %cst_12 = arith.constant dense<0.000000e+00> : vector<24xf32>
    %18 = vector.multi_reduction <add>, %17, %cst_12 [1] : vector<24x64xf32> to vector<24xf32>
    %19 = vector.shape_cast %18 : vector<24xf32> to vector<1x1x24xf32>
    %c0_13 = arith.constant 0 : index
    %c0_14 = arith.constant 0 : index
    %20 = vector.load %arg7[%c0_13, %c0_14] : memref<1x1xf32, #tpu.memory_space<vmem>>, vector<1x1xf32>
    %21 = vector.shape_cast %20 : vector<1x1xf32> to vector<1x1x1xf32>
    %22 = vector.broadcast %21 : vector<1x1x1xf32> to vector<1x1x24xf32>
    %23 = arith.addf %19, %22 : vector<1x1x24xf32>
    %c0_15 = arith.constant 0 : index
    %c0_16 = arith.constant 0 : index
    %c0_17 = arith.constant 0 : index
    %24 = vector.load %arg8[%c0_15, %c0_16, %c0_17] : memref<1x1x24xf32, #tpu.memory_space<vmem>>, vector<1x1x24xf32>
    tpu.vector_store %arg8[%c0_15, %c0_16, %c0_17], %23 {strides = array<i32>} : memref<1x1x24xf32, #tpu.memory_space<vmem>>, vector<1x1x24xf32>,
    return
  }
  func.func @transform_0(%arg0: i32) -> (i32, i32) {
    %c0_i32 = arith.constant 0 : i32
    %c0_i32_0 = arith.constant 0 : i32
    return %arg0, %c0_i32 : i32, i32
  }
  func.func @transform_1(%arg0: i32) -> (i32, i32) {
    %c0_i32 = arith.constant 0 : i32
    %c0_i32_0 = arith.constant 0 : i32
    %c0_i32_1 = arith.constant 0 : i32
    return %c0_i32, %c0_i32_0 : i32, i32
  }
  func.func @transform_2(%arg0: i32) -> (i32, i32) {
    %c0_i32 = arith.constant 0 : i32
    %c0_i32_0 = arith.constant 0 : i32
    %c0_i32_1 = arith.constant 0 : i32
    return %c0_i32, %c0_i32_0 : i32, i32
  }
  func.func @transform_3(%arg0: i32) -> (i32, i32) {
    %c0_i32 = arith.constant 0 : i32
    %c0_i32_0 = arith.constant 0 : i32
    %c0_i32_1 = arith.constant 0 : i32
    return %c0_i32, %c0_i32_0 : i32, i32
  }
  func.func @transform_4(%arg0: i32) -> (i32, i32) {
    %c0_i32 = arith.constant 0 : i32
    %c0_i32_0 = arith.constant 0 : i32
    %c0_i32_1 = arith.constant 0 : i32
    return %c0_i32, %c0_i32_0 : i32, i32
  }
  func.func @transform_5(%arg0: i32) -> (i32, i32) {
    %c0_i32 = arith.constant 0 : i32
    %c0_i32_0 = arith.constant 0 : i32
    %c0_i32_1 = arith.constant 0 : i32
    return %c0_i32, %c0_i32_0 : i32, i32
  }
  func.func @transform_6(%arg0: i32) -> (i32, i32) {
    %c0_i32 = arith.constant 0 : i32
    %c0_i32_0 = arith.constant 0 : i32
    %c0_i32_1 = arith.constant 0 : i32
    return %c0_i32, %c0_i32_0 : i32, i32
  }
  func.func @transform_7(%arg0: i32) -> (i32, i32, i32) {
    %c0_i32 = arith.constant 0 : i32
    %c0_i32_0 = arith.constant 0 : i32
    %c0_i32_1 = arith.constant 0 : i32
    return %arg0, %c0_i32, %c0_i32_0 : i32, i32, i32
  }
}

</mosaic_0001>

<bundles_post_ra>
// kernel: tpu_custom_call.1
= control target key start
LH: loop header
LB: loop body
LE: loop exit
PB: predicated region body
PF: predicated region fallthrough
CT: control target
= control target key end

     0   :  { %s455_s0 = inlined_call_operand.vmem [shape: f32[24,16], index: 0, kind: input, shape index: {}]   ;;  %s456_s1 = inlined_call_operand.vmem [shape: bf16[16,64], index: 1, kind: input, shape index: {}]   ;;  %s457_s2 = inlined_call_operand.vmem [shape: f32[1,64], index: 2, kind: input, shape index: {}]   ;;  %s458_s3 = inlined_call_operand.vmem [shape: bf16[64,64], index: 3, kind: input, shape index: {}]   ;;  %s459_s4 = inlined_call_operand.vmem [shape: f32[1,64], index: 4, kind: input, shape index: {}]   ;;  %s460_s5 = inlined_call_operand.vmem [shape: f32[1,64], index: 5, kind: input, shape index: {}]   ;;  %s461_s6 = inlined_call_operand.<no memory space> [shape: f32[1,1], index: 6, kind: input, shape index: {}]   ;;  %s462_s7 = inlined_call_operand.hbm [shape: f32[1,1,24], index: 7, kind: output, shape index: {}]  }
   0x1   :  { %v12_v0 = vstv %s461_s6 }
   0x2   :  { %13 = vst [vmem:[#allocation2] sm:$0x1] %v12_v0 }
   0x3   :  { %v321_v1 = vld [vmem:[%s456_s1] sm:$0xff]   ;;  %v31_v3 = vld [vmem:[%s455_s0 + $0x8] sm:$0xff]  ;;  %vm50_vm0 = vcmask 130048   ;;  %v32_v4 = vld [vmem:[%s455_s0 + $0x10] sm:$0xff] }
   0x4   :  { %v30_v2 = vld [vmem:[%s455_s0] sm:$0xff]  ;;  %299 = vmatprep.subr.bf16.mxu0 %v321_v1  ;;  %v34_v6 = vpack.c.bf16 %v32_v4, %v32_v4 }
   0x5   :  { %v33_v5 = vpack.c.bf16 %v31_v3, %v30_v2  ;;  %300 = vmatpush3.bf16.msra.mxu0 %v321_v1 }
   0x7   :  { %301 = vmatprep.mubr.msk.bf16.mxu0 %vm50_vm0, %v33_v5 }
   0x8   :  { %14 = vsyncpa [#allocation4], 0  ;;  %302 = vmatmul.mubr.msk.bf16.vlgmr.msra.gmra.mrb[0].mxu0 %vm50_vm0, %v34_v6  ;;  %v322_v7 = vld [vmem:[%s458_s3] sm:$0xff]   ;;  %v323_v8 = vld [vmem:[%s458_s3 + $0x8] sm:$0xff]   ;;  %vm148_vm1 = vcmask 523264   ;;  %v360_v23 = vmov 0   ;;  %v231_v43 = vlaneseq }
   0x9   :  { %305 = vmatprep.subr.bf16.mxu1 %v322_v7  ;;  %v324_v9 = vld [vmem:[%s458_s3 + $0x10] sm:$0xff]   ;;  %v325_v10 = vld [vmem:[%s458_s3 + $0x18] sm:$0xff]   ;;  %v278_v11 = vld [vmem:[%s457_s2] ss:$0 sm:$0xff]  ;;  %319 = vset.pattern.permute.xlu1 %v360_v23  ;;  %vm252_vm2 = vcmask 130112   ;;  %vm259_vm3 = vcmask 195712  }
   0xa   :  { %306 = vmatpush3.bf16.msra.mxu1 %v322_v7  ;;  %320 = vset.pattern.permute.xlu0 %v360_v23  ;;  %v282_v24 = vld [vmem:[%s459_s4] ss:$0 sm:$0xff]  ;;  %v232_v44 = vshrl.u32 %v231_v43, 7  ;;  %v242_v45 = vand.u32 127, %v231_v43  ;;  %s361_s4 = smov [#allocation3]   ;;  %vm262_vm4 = vcmask 188416  }
   0xb   :  { %307 = vmatprep.subr.bf16.mxu1 %v323_v8  ;;  %v289_v32 = vld [vmem:[%s460_s5] ss:$0 sm:$0xff]  ;;  %s270_s5 = sshll.u32 %s361_s4, 4  ;;  %s271_s5 = int_to_ptr.vmem [resolvable:$true] %s270_s5 }
   0xc   :  { %v225_v42 = vld [vmem:[#allocation2] sm:$0x1]  ;;  %v233_v48 = vsub.s32 0, %v232_v44  ;;  %v254_v49 = vadd.s32 4294967280, %v242_v45  ;;  %v247_v50 = vadd.s32 4294967288, %v242_v45  ;;  %v245_v52 = vsub.s32 %v242_v45, %v232_v44  ;;  %s336_s20 = scalar_lea.vmem %s271_s5, 16  ;;  %p341_p1 = scmp.lt.s32.totalorder %s271_s5, %s271_s5 }
   0xd   :  { %p337_p0 = scmp.ne.s32.totalorder %s271_s5, %s336_s20  ;;  %s340_s21 = scalar_lea.vmem %s271_s5, 32 }
   0xe   :  { %308 = vmatpush3.bf16.msra.mxu1 %v323_v8  ;;  %v257_v53 = vsub.s32 %v254_v49, %v232_v44  ;;  %v250_v55 = vsub.s32 %v247_v50, %v232_v44  ;;  %p342_p2 = scmp.lt.s32.totalorder %s340_s21, %s336_s20 }
   0xf   :  { %309 = vmatprep.subr.bf16.mxu1 %v324_v9 }
  0x10   :  { %p343_p3 = por %p342_p2, %p341_p1 }
  0x12   :  { %310 = vmatpush3.bf16.msra.mxu1 %v324_v9  ;;  %p344_p4 = pnand %p343_p3, %p337_p0 }
  0x13   :  { %311 = vmatprep.subr.bf16.mxu1 %v325_v10 }
  0x16   :  { %312 = vmatpush3.bf16.msra.mxu1 %v325_v10 }
  0xdb   :  { %v303_v12 = vpop.f32.mrb[0].mxu0 }
  0xdc   :  { %v100_v13 = vadd.f32 %v303_v12, %v278_v11  ;;  %v91_v14 = vpop.f32.mrb[1].mxu0 }
  0xdd   :  { %v304_v15 = vpop.f32.mrb[2].mxu0  ;;  %v92_v17 = vadd.f32 %v278_v11, %v91_v14 }
  0xde   :  { %v94_v16 = vpop.f32.mrb[3].mxu0  ;;  %v106_v19 = vpack.c.bf16 %v100_v13, %v100_v13 }
  0xdf   :  { %v95_v18 = vadd.f32 %v278_v11, %v94_v16 }
  0xe1   :  { %v105_v20 = vpack.c.bf16 %v95_v18, %v92_v17 }
  0xe3   :  { %326 = vtanh.bf16 %v105_v20 }
  0xe4   :  { %328 = vtanh.bf16 %v106_v19 }
  0xee   :  { %v327_v21 = vpop.eup %326 }
  0xef   :  { %v329_v22 = vpop.eup %328  ;;  %313 = vmatprep.mubr.msk.bf16.mxu1 %vm148_vm1, %v327_v21 }
  0xf0   :  { %314 = vmatmul.mubr.msk.bf16.vlgmr.msra.gmra.mrb[0].mxu1 %vm148_vm1, %v329_v22 }
 0x1c3   :  { %v315_v25 = vpop.f32.mrb[0].mxu1 }
 0x1c4   :  { %v198_v26 = vadd.f32 %v315_v25, %v282_v24  ;;  %v189_v27 = vpop.f32.mrb[1].mxu1 }
 0x1c5   :  { %v190_v28 = vadd.f32 %v282_v24, %v189_v27  ;;  %v316_v29 = vpop.f32.mrb[2].mxu1 }
 0x1c6   :  { %330 = vtanh.f32 %v198_v26  ;;  %v192_v30 = vpop.f32.mrb[3].mxu1 }
 0x1c7   :  { %332 = vtanh.f32 %v190_v28  ;;  %v193_v31 = vadd.f32 %v282_v24, %v192_v30 }
 0x1c9   :  { %334 = vtanh.f32 %v193_v31 }
 0x1d0   :  { %v331_v33 = vpop.eup %330 }
 0x1d1   :  { %v333_v34 = vpop.eup %332  ;;  %v215_v35 = vmul.f32 %v331_v33, %v289_v32 }
 0x1d2   :  { %v213_v36 = vmul.f32 %v333_v34, %v289_v32 }
 0x1d3   :  { %v335_v37 = vpop.eup %334  ;;  %v222_v38 = vsel %vm148_vm1, %v215_v35, 0.0 }
 0x1d4   :  { %223 = vadd.xlane.f32.xlu1 %v222_v38  ;;  %v216_v39 = vsel %vm148_vm1, %v213_v36, 0.0  ;;  %v214_v40 = vmul.f32 %v335_v37, %v289_v32 }
 0x1d5   :  { %217 = vadd.xlane.f32.xlu0 %v216_v39 }
 0x1d6   :  { %v219_v41 = vsel %vm148_vm1, %v214_v40, 0.0 }
 0x1d9   :  { %220 = vadd.xlane.f32.xlu0 %v219_v41 }
 0x1e5   :  { %228 = vperm.xlu1 %319, %v225_v42  }
 0x261   :  { %v224_v46 = vpop.xlane.xlu1 %223 }
 0x262   :  { %v218_v47 = vpop.xlane.xlu0 %217 }
 0x265   :  { %v229_v51 = vpop.permute.xlu1 %228 }
 0x266   :  { %v234_v54 = vrot.slane %v229_v51, %v233_v48  ;;  %v221_v56 = vpop.xlane.xlu0 %220 }
 0x268   :  { %v235_v57 = vadd.f32 %v234_v54, %v218_v47  ;;  %v237_v58 = vadd.f32 %v234_v54, %v224_v46  ;;  %v236_v59 = vadd.f32 %v234_v54, %v221_v56 }
 0x26a   :  { %v246_v60 = vrot.slane %v235_v57, %v245_v52  ;;  %v258_v61 = vrot.slane %v237_v58, %v257_v53  ;;  %v251_v62 = vrot.slane %v236_v59, %v250_v55 }
 0x26c   :  { %v253_v63 = vsel %vm252_vm2, %v251_v62, %v246_v60 }
 0x26d   :  { %v260_v0 = vsel %vm259_vm3, %v258_v61, %v253_v63 }
 0x26e   :  { %263 = vst.msk [vmem:[#allocation3] sm:$0x1] %vm262_vm4, %v260_v0 }
 0x26f   :  { %347 = shalt.err (!%p344_p4)
}
 0x270   :  { %s348_s24 = scalar_lea.hbm %s462_s7, 16 }
 0x271   :  { %p349_p5 = scmp.ne.s32.totalorder %s462_s7, %s348_s24  ;;  %p352_p6 = scmp.lt.u32.totalorder %s348_s24, %s462_s7 }
 0x273   :  { %p354_p7 = pnand %p352_p6, %p349_p5 }
 0x275   :  { %357 = shalt.err (!%p354_p7)
}
 0x276   :  { %273 = dma.vmem_to_hbm [thread:$0]  %s271_s5, 16, %s462_s7, [#allocation4]  }
 0x277   :  { %358 = dma.done.wait [#allocation4], 16  }
 0x278   :  { %359 = vsyncadd [#allocation4], 4294967280 }
 0x279   :  { %277 = vsyncpa [#allocation4], 1 }

</bundles_post_ra>
